<compile_context>
chip_gen: v6e
topology: v6e:2x2x1
jax: 0.10.0
libtpu: 0.0.40
codegen_flags: <defaults>
</compile_context>

<pallas_src>
import math

import jax
import jax.numpy as jnp
from jax.experimental import pallas as pl
from jax.experimental.pallas import tpu as pltpu


_SQRT_HALF = 0.7071067811865476


def _erf_f32(z):
    """erf via Abramowitz & Stegun 7.1.26 (max abs err ~1.5e-7).

    Uses only exp / mul / add / select / div, which all lower cleanly in Mosaic, so
    exact-GELU semantics are preserved without relying on an erf lowering rule.
    The exp goes to the EUP slot; the single divide is kept exact to preserve tolerance.
    """
    a1, a2, a3, a4, a5 = (0.254829592, -0.284496736, 1.421413741,
                          -1.453152027, 1.061405429)
    p = 0.3275911
    az = jnp.abs(z)
    t = 1.0 / (1.0 + p * az)
    poly = ((((a5 * t + a4) * t + a3) * t + a2) * t + a1) * t
    e = 1.0 - poly * jnp.exp(-az * az)
    return jnp.where(z >= 0, e, -e)


def _ffn_kernel(x_ref, g_ref, w1_ref, b1_ref, w2_ref, b2_ref, o_ref, xn_ref, acc_ref):
    # x_ref : (TM, D)       g_ref : (1, D) f32  (= gamma * sqrt(D))
    # w1_ref: (D, TDI)      b1_ref: (1, TDI)
    # w2_ref: (TDI, D)      b2_ref: (1, D)
    # o_ref : (TM, D)
    # xn_ref: (TM, D) scratch in x dtype   acc_ref: (TM, D) f32 scratch
    di = pl.program_id(1)
    n_di = pl.num_programs(1)

    @pl.when(di == 0)
    def _():
        # RMSNorm == F.normalize(x, dim=-1) * sqrt(D) * gamma, computed in f32.
        # rsqrt goes to the EUP slot; max(sumsq, 1e-24) == max(||x||, 1e-12) semantics
        # of F.normalize up to f32 rounding.
        x = x_ref[...].astype(jnp.float32)
        sumsq = jnp.sum(x * x, axis=-1, keepdims=True)          # (TM, 1)
        inv = jax.lax.rsqrt(jnp.maximum(sumsq, 1e-24))
        xn_ref[...] = ((x * inv) * g_ref[...]).astype(xn_ref.dtype)
        acc_ref[...] = jnp.zeros_like(acc_ref)

    # First matmul on native-dtype operands (bf16 MXU rate for bf16 models), f32 accum.
    h = jnp.dot(xn_ref[...], w1_ref[...], preferred_element_type=jnp.float32)
    h = h + b1_ref[...].astype(jnp.float32)

    # Exact (erf-based) GELU, matching nn.GELU() default.
    h = 0.5 * h * (1.0 + _erf_f32(h * _SQRT_HALF))

    # TODO(synk): nn.Dropout is identity at inference / dropout=0 (module default), so it is omitted.

    # Second matmul: cast hidden back to weight dtype, accumulate in f32 VMEM scratch.
    acc_ref[...] += jnp.dot(h.astype(w2_ref.dtype), w2_ref[...],
                            preferred_element_type=jnp.float32)

    @pl.when(di == n_di - 1)
    def _():
        o_ref[...] = (acc_ref[...] + b2_ref[...].astype(jnp.float32)).astype(o_ref.dtype)


def _vmem_budget_and_limit():
    """Generation-aware VMEM budget (bytes): ~70% of physical for tiling, ~80% as limit."""
    cap = 64 * 1024 * 1024                                      # conservative fallback (v7x per-TC)
    try:
        info = pltpu.get_tpu_info()
        cap = int(getattr(info, "vmem_capacity_bytes", cap)) or cap
    except Exception:
        pass
    budget = min(int(cap * 0.70), 100 * 1024 * 1024)
    limit = min(int(cap * 0.80), 112 * 1024 * 1024)
    return budget, limit


def _pick_tiles(M, dim, dim_inner, x_itemsize, w_itemsize, vmem_budget_bytes):
    """Pick (tm, tdi) so that all double-buffered blocks + scratch + f32 temps fit VMEM."""

    def vmem_bytes(tm, tdi):
        streamed = 2 * (2 * tm * dim * x_itemsize               # x tile + out tile (2x buffered)
                        + dim * tdi * w_itemsize                # W1 column block
                        + tdi * dim * w_itemsize                # W2 row block
                        + tdi * w_itemsize)                     # b1 block
        resident = 2 * (dim * 4 + dim * 4)                      # gamma (f32) + b2 (2x buffered)
        scratch = tm * dim * x_itemsize + tm * dim * 4          # xn scratch + f32 accumulator
        temps = 4 * tm * tdi * 4                                # f32 hidden tile + GELU temps
        return streamed + resident + scratch + temps

    # dim_inner tile: lane-aligned divisor of dim_inner so no partial DI block feeds
    # garbage into the accumulator; fall back to a single full-width step.
    tdi_cands = [t for t in (2048, 1024, 512, 256, 128)
                 if t <= dim_inner and dim_inner % t == 0]
    tdi_cands.append(dim_inner)

    # M tile: MXU-friendly sizes (256-aligned preferred for v6e/v7x, 128 for v5e);
    # small problems just take the full extent (allowed as a full-dim block).
    if M <= 256:
        tm_cands = [M]
    else:
        tm_cands = [t for t in (512, 256, 128, 64, 32, 16, 8) if t <= M]

    for tm in tm_cands:
        for tdi in tdi_cands:
            if vmem_bytes(tm, tdi) <= vmem_budget_bytes:
                return tm, tdi
    return tm_cands[-1], tdi_cands[-1]


def feed_forward(x, gamma, w1, b1, w2, b2, *, tm=None, tdi=None):
    """FeedForward forward pass.

    x: (..., dim); gamma: (dim,); w1: (dim, dim_inner); b1: (dim_inner,);
    w2: (dim_inner, dim); b2: (dim,).  (w1/w2 are PyTorch nn.Linear weights transposed.)
    Returns (..., dim).
    """
    *lead, dim = x.shape
    dim_inner = w1.shape[1]
    M = math.prod(lead) if lead else 1

    x2 = x.reshape(M, dim)                                      # free view (contiguous)
    # Keep the RMSNorm scale in f32 regardless of activation dtype.
    g = (gamma.astype(jnp.float32) * jnp.float32(dim ** 0.5)).reshape(1, dim)
    b1r = b1.reshape(1, dim_inner)
    b2r = b2.reshape(1, dim)

    vmem_budget, vmem_limit = _vmem_budget_and_limit()
    auto_tm, auto_tdi = _pick_tiles(M, dim, dim_inner, x.dtype.itemsize,
                                    w1.dtype.itemsize, vmem_budget)
    tm = auto_tm if tm is None else tm
    tdi = auto_tdi if tdi is None else tdi

    num_m = pl.cdiv(M, tm)
    num_di = pl.cdiv(dim_inner, tdi)
    grid = (num_m, num_di)

    x_itemsize = x.dtype.itemsize
    w_itemsize = w1.dtype.itemsize
    cost = pl.CostEstimate(
        flops=4 * M * dim * dim_inner,                          # two matmuls
        transcendentals=M * dim_inner + M,                      # exp (erf) + rsqrt
        bytes_accessed=(2 * M * dim * x_itemsize                # x in + out
                        + num_m * (2 * dim * dim_inner + dim_inner) * w_itemsize
                        + 2 * dim * 4),
    )

    out = pl.pallas_call(
        _ffn_kernel,
        out_shape=jax.ShapeDtypeStruct((M, dim), x.dtype),
        grid_spec=pltpu.PrefetchScalarGridSpec(
            num_scalar_prefetch=0,
            grid=grid,
            in_specs=[
                pl.BlockSpec((tm, dim), lambda m, di: (m, 0)),         # x tile (reused over DI)
                pl.BlockSpec((1, dim), lambda m, di: (0, 0)),          # gamma*sqrt(dim), f32
                pl.BlockSpec((dim, tdi), lambda m, di: (0, di)),       # W1 column block
                pl.BlockSpec((1, tdi), lambda m, di: (0, di)),         # b1 block
                pl.BlockSpec((tdi, dim), lambda m, di: (di, 0)),       # W2 row block
                pl.BlockSpec((1, dim), lambda m, di: (0, 0)),          # b2
            ],
            out_specs=pl.BlockSpec((tm, dim), lambda m, di: (m, 0)),   # resident over DI
            scratch_shapes=[
                pltpu.VMEM((tm, dim), x.dtype),                        # normalized x
                pltpu.VMEM((tm, dim), jnp.float32),                    # f32 accumulator
            ],
        ),
        compiler_params=pltpu.CompilerParams(
            dimension_semantics=("parallel", "arbitrary"),             # M sharded, DI reduction
            vmem_limit_bytes=vmem_limit,
        ),
        cost_estimate=cost,
    )(x2, g, w1, b1r, w2, b2r)

    return out.reshape(*lead, dim)


def feed_forward_reference(x, gamma, w1, b1, w2, b2):
    """Pure-JAX reference mirroring the PyTorch forward (eval mode)."""
    dim = x.shape[-1]
    norm = jnp.sqrt(jnp.sum(x * x, axis=-1, keepdims=True))
    xn = x / jnp.maximum(norm, 1e-12) * (dim ** 0.5) * gamma
    h = xn @ w1 + b1
    h = 0.5 * h * (1.0 + jax.scipy.special.erf(h / jnp.sqrt(2.0)))     # exact GELU
    return h @ w2 + b2


def _make_params(key, dim, dim_inner, dtype=jnp.float32):
    kw1, kb1, kw2, kb2 = jax.random.split(key, 4)
    gamma = jnp.ones((dim,), dtype=dtype)                              # RMSNorm init: ones
    w1 = jax.random.normal(kw1, (dim, dim_inner), dtype=dtype) * (1.0 / (dim ** 0.5))
    b1 = jax.random.normal(kb1, (dim_inner,), dtype=dtype) * 0.01
    w2 = jax.random.normal(kw2, (dim_inner, dim), dtype=dtype) * (1.0 / (dim_inner ** 0.5))
    b2 = jax.random.normal(kb2, (dim,), dtype=dtype) * 0.01
    return gamma, w1, b1, w2, b2


if __name__ == "__main__":
    key = jax.random.PRNGKey(0)
    kx, kp, kx2, kp2 = jax.random.split(key, 4)

    # --- Primary test: module-consistent small shapes (single-tile path). ---
    B, T, dim, mult = 2, 8, 32, 4
    dim_inner = dim * mult
    x = jax.random.normal(kx, (B, T, dim), dtype=jnp.float32)
    gamma, w1, b1, w2, b2 = _make_params(kp, dim, dim_inner)

    out = feed_forward(x, gamma, w1, b1, w2, b2)
    out = jax.block_until_ready(out)
    ref = feed_forward_reference(x, gamma, w1, b1, w2, b2)
    assert out.shape == (B, T, dim), out.shape
    assert jnp.allclose(out, ref, atol=1e-3, rtol=1e-3), "mismatch vs reference (single tile)"

    # --- Secondary test: force multi-tile grid (2 M tiles x 2 DI tiles) to exercise the
    #     resident accumulator / streamed-weight path. ---
    dim_b, mult_b = 64, 4
    dim_inner_b = dim_b * mult_b
    xb = jax.random.normal(kx2, (B, T, dim_b), dtype=jnp.float32)
    gamma_b, w1_b, b1_b, w2_b, b2_b = _make_params(kp2, dim_b, dim_inner_b)

    out_b = feed_forward(xb, gamma_b, w1_b, b1_b, w2_b, b2_b, tm=8, tdi=128)
    out_b = jax.block_until_ready(out_b)
    ref_b = feed_forward_reference(xb, gamma_b, w1_b, b1_b, w2_b, b2_b)
    assert out_b.shape == (B, T, dim_b), out_b.shape
    assert jnp.allclose(out_b, ref_b, atol=1e-3, rtol=1e-3), "mismatch vs reference (tiled)"

    print("KERNEL_OK")
</pallas_src>

<mosaic_0001>
module attributes {stable_mosaic.version = 11 : i64} {
  func.func @_ffn_kernel(%arg0: i32, %arg1: i32, %arg2: memref<16x32xf32, #tpu.memory_space<vmem>>, %arg3: memref<1x32xf32, #tpu.memory_space<vmem>>, %arg4: memref<32x128xf32, #tpu.memory_space<vmem>>, %arg5: memref<1x128xf32, #tpu.memory_space<vmem>>, %arg6: memref<128x32xf32, #tpu.memory_space<vmem>>, %arg7: memref<1x32xf32, #tpu.memory_space<vmem>>, %arg8: memref<16x32xf32, #tpu.memory_space<vmem>>, %arg9: memref<16x32xf32, #tpu.memory_space<vmem>>, %arg10: memref<16x32xf32, #tpu.memory_space<vmem>>) attributes {dimension_semantics = [#tpu.dimension_semantics<parallel>, #tpu.dimension_semantics<arbitrary>], iteration_bounds = array<i64: 1, 1>, scalar_prefetch = 0 : i64, scratch_operands = 2 : i64, tpu.core_type = #tpu.core_type<tc>, window_params = [{transform_indices = @transform_0, window_bounds = array<i64: 16, 32>}, {pipeline_mode = #tpu.pipeline_mode<synchronous>, transform_indices = @transform_1, window_bounds = array<i64: 1, 32>}, {transform_indices = @transform_2, window_bounds = array<i64: 32, 128>}, {transform_indices = @transform_3, window_bounds = array<i64: 1, 128>}, {transform_indices = @transform_4, window_bounds = array<i64: 128, 32>}, {pipeline_mode = #tpu.pipeline_mode<synchronous>, transform_indices = @transform_5, window_bounds = array<i64: 1, 32>}, {transform_indices = @transform_6, window_bounds = array<i64: 16, 32>}]} {
    %c0_i32 = arith.constant 0 : i32
    %0 = arith.cmpi eq, %arg1, %c0_i32 : i32
    %1 = arith.extui %0 : i1 to i32
    %c0_i32_0 = arith.constant 0 : i32
    %2 = arith.cmpi ne, %1, %c0_i32_0 : i32
    scf.if %2 {
      %c0_30 = arith.constant 0 : index
      %c0_31 = arith.constant 0 : index
      %57 = vector.load %arg2[%c0_30, %c0_31] : memref<16x32xf32, #tpu.memory_space<vmem>>, vector<16x32xf32>
      %58 = arith.mulf %57, %57 : vector<16x32xf32>
      %cst_32 = arith.constant dense<0.000000e+00> : vector<16xf32>
      %59 = vector.multi_reduction <add>, %58, %cst_32 [1] : vector<16x32xf32> to vector<16xf32>
      %60 = vector.shape_cast %59 : vector<16xf32> to vector<16x1xf32>
      %cst_33 = arith.constant 1.000000e-24 : f32
      %61 = vector.broadcast %cst_33 : f32 to vector<16x1xf32>
      %62 = arith.maximumf %60, %61 : vector<16x1xf32>
      %63 = math.rsqrt %62 : vector<16x1xf32>
      %64 = vector.broadcast %63 : vector<16x1xf32> to vector<16x32xf32>
      %65 = arith.mulf %57, %64 : vector<16x32xf32>
      %c0_34 = arith.constant 0 : index
      %c0_35 = arith.constant 0 : index
      %66 = vector.load %arg3[%c0_34, %c0_35] : memref<1x32xf32, #tpu.memory_space<vmem>>, vector<1x32xf32>
      %67 = vector.broadcast %66 : vector<1x32xf32> to vector<16x32xf32>
      %68 = arith.mulf %65, %67 : vector<16x32xf32>
      %c0_36 = arith.constant 0 : index
      %c0_37 = arith.constant 0 : index
      %69 = vector.load %arg9[%c0_36, %c0_37] : memref<16x32xf32, #tpu.memory_space<vmem>>, vector<16x32xf32>
      tpu.vector_store %arg9[%c0_36, %c0_37], %68 {strides = array<i32>} : memref<16x32xf32, #tpu.memory_space<vmem>>, vector<16x32xf32>,
      %cst_38 = arith.constant 0.000000e+00 : f32
      %70 = vector.broadcast %cst_38 : f32 to vector<16x32xf32>
      %c0_39 = arith.constant 0 : index
      %c0_40 = arith.constant 0 : index
      %71 = vector.load %arg10[%c0_39, %c0_40] : memref<16x32xf32, #tpu.memory_space<vmem>>, vector<16x32xf32>
      tpu.vector_store %arg10[%c0_39, %c0_40], %70 {strides = array<i32>} : memref<16x32xf32, #tpu.memory_space<vmem>>, vector<16x32xf32>,
    } else {
    }
    %c0 = arith.constant 0 : index
    %c0_1 = arith.constant 0 : index
    %3 = vector.load %arg9[%c0, %c0_1] : memref<16x32xf32, #tpu.memory_space<vmem>>, vector<16x32xf32>
    %c0_2 = arith.constant 0 : index
    %c0_3 = arith.constant 0 : index
    %4 = vector.load %arg4[%c0_2, %c0_3] : memref<32x128xf32, #tpu.memory_space<vmem>>, vector<32x128xf32>
    %cst = arith.constant dense<0.000000e+00> : vector<16x128xf32>
    %5 = tpu.matmul %3, %4, %cst {dimension_numbers = #tpu.dot_dimension_numbers<[1], [0], [0], [1], [0, 0, 1, 1], [], []>} : vector<16x32xf32>, vector<32x128xf32>, vector<16x128xf32> -> vector<16x128xf32>
    %c0_4 = arith.constant 0 : index
    %c0_5 = arith.constant 0 : index
    %6 = vector.load %arg5[%c0_4, %c0_5] : memref<1x128xf32, #tpu.memory_space<vmem>>, vector<1x128xf32>
    %7 = vector.broadcast %6 : vector<1x128xf32> to vector<16x128xf32>
    %8 = arith.addf %5, %7 : vector<16x128xf32>
    %cst_6 = arith.constant 5.000000e-01 : f32
    %9 = vector.broadcast %cst_6 : f32 to vector<16x128xf32>
    %10 = arith.mulf %9, %8 : vector<16x128xf32>
    %cst_7 = arith.constant 0.707106769 : f32
    %11 = vector.broadcast %cst_7 : f32 to vector<16x128xf32>
    %12 = arith.mulf %8, %11 : vector<16x128xf32>
    %13 = math.absf %12 : vector<16x128xf32>
    %cst_8 = arith.constant 0.327591091 : f32
    %14 = vector.broadcast %cst_8 : f32 to vector<16x128xf32>
    %15 = arith.mulf %14, %13 : vector<16x128xf32>
    %cst_9 = arith.constant 1.000000e+00 : f32
    %16 = vector.broadcast %cst_9 : f32 to vector<16x128xf32>
    %17 = arith.addf %16, %15 : vector<16x128xf32>
    %cst_10 = arith.constant 1.000000e+00 : f32
    %18 = vector.broadcast %cst_10 : f32 to vector<16x128xf32>
    %19 = arith.divf %18, %17 : vector<16x128xf32>
    %cst_11 = arith.constant 1.06140542 : f32
    %20 = vector.broadcast %cst_11 : f32 to vector<16x128xf32>
    %21 = arith.mulf %20, %19 : vector<16x128xf32>
    %cst_12 = arith.constant -1.45315206 : f32
    %22 = vector.broadcast %cst_12 : f32 to vector<16x128xf32>
    %23 = arith.addf %21, %22 : vector<16x128xf32>
    %24 = arith.mulf %23, %19 : vector<16x128xf32>
    %cst_13 = arith.constant 1.42141378 : f32
    %25 = vector.broadcast %cst_13 : f32 to vector<16x128xf32>
    %26 = arith.addf %24, %25 : vector<16x128xf32>
    %27 = arith.mulf %26, %19 : vector<16x128xf32>
    %cst_14 = arith.constant -0.284496725 : f32
    %28 = vector.broadcast %cst_14 : f32 to vector<16x128xf32>
    %29 = arith.addf %27, %28 : vector<16x128xf32>
    %30 = arith.mulf %29, %19 : vector<16x128xf32>
    %cst_15 = arith.constant 0.254829586 : f32
    %31 = vector.broadcast %cst_15 : f32 to vector<16x128xf32>
    %32 = arith.addf %30, %31 : vector<16x128xf32>
    %33 = arith.mulf %32, %19 : vector<16x128xf32>
    %cst_16 = arith.constant 0.000000e+00 : f32
    %34 = vector.broadcast %cst_16 : f32 to vector<16x128xf32>
    %35 = arith.subf %34, %13 : vector<16x128xf32>
    %36 = arith.mulf %35, %13 : vector<16x128xf32>
    %37 = math.exp %36 : vector<16x128xf32>
    %38 = arith.mulf %33, %37 : vector<16x128xf32>
    %cst_17 = arith.constant 1.000000e+00 : f32
    %39 = vector.broadcast %cst_17 : f32 to vector<16x128xf32>
    %40 = arith.subf %39, %38 : vector<16x128xf32>
    %cst_18 = arith.constant 0.000000e+00 : f32
    %41 = vector.broadcast %cst_18 : f32 to vector<16x128xf32>
    %42 = arith.cmpf oge, %12, %41 : vector<16x128xf32>
    %cst_19 = arith.constant 0.000000e+00 : f32
    %43 = vector.broadcast %cst_19 : f32 to vector<16x128xf32>
    %44 = arith.subf %43, %40 : vector<16x128xf32>
    %45 = arith.select %42, %40, %44 : vector<16x128xi1>, vector<16x128xf32>
    %cst_20 = arith.constant 1.000000e+00 : f32
    %46 = vector.broadcast %cst_20 : f32 to vector<16x128xf32>
    %47 = arith.addf %46, %45 : vector<16x128xf32>
    %48 = arith.mulf %10, %47 : vector<16x128xf32>
    %c0_21 = arith.constant 0 : index
    %c0_22 = arith.constant 0 : index
    %49 = vector.load %arg10[%c0_21, %c0_22] : memref<16x32xf32, #tpu.memory_space<vmem>>, vector<16x32xf32>
    %c0_23 = arith.constant 0 : index
    %c0_24 = arith.constant 0 : index
    %50 = vector.load %arg6[%c0_23, %c0_24] : memref<128x32xf32, #tpu.memory_space<vmem>>, vector<128x32xf32>
    %cst_25 = arith.constant dense<0.000000e+00> : vector<16x32xf32>
    %51 = tpu.matmul %48, %50, %cst_25 {dimension_numbers = #tpu.dot_dimension_numbers<[1], [0], [0], [1], [0, 0, 1, 1], [], []>} : vector<16x128xf32>, vector<128x32xf32>, vector<16x32xf32> -> vector<16x32xf32>
    %52 = arith.addf %49, %51 : vector<16x32xf32>
    %c0_26 = arith.constant 0 : index
    %c0_27 = arith.constant 0 : index
    %53 = vector.load %arg10[%c0_26, %c0_27] : memref<16x32xf32, #tpu.memory_space<vmem>>, vector<16x32xf32>
    tpu.vector_store %arg10[%c0_26, %c0_27], %52 {strides = array<i32>} : memref<16x32xf32, #tpu.memory_space<vmem>>, vector<16x32xf32>,
    %c0_i32_28 = arith.constant 0 : i32
    %54 = arith.cmpi eq, %arg1, %c0_i32_28 : i32
    %55 = arith.extui %54 : i1 to i32
    %c0_i32_29 = arith.constant 0 : i32
    %56 = arith.cmpi ne, %55, %c0_i32_29 : i32
    scf.if %56 {
      %c0_30 = arith.constant 0 : index
      %c0_31 = arith.constant 0 : index
      %57 = vector.load %arg10[%c0_30, %c0_31] : memref<16x32xf32, #tpu.memory_space<vmem>>, vector<16x32xf32>
      %c0_32 = arith.constant 0 : index
      %c0_33 = arith.constant 0 : index
      %58 = vector.load %arg7[%c0_32, %c0_33] : memref<1x32xf32, #tpu.memory_space<vmem>>, vector<1x32xf32>
      %59 = vector.broadcast %58 : vector<1x32xf32> to vector<16x32xf32>
      %60 = arith.addf %57, %59 : vector<16x32xf32>
      %c0_34 = arith.constant 0 : index
      %c0_35 = arith.constant 0 : index
      %61 = vector.load %arg8[%c0_34, %c0_35] : memref<16x32xf32, #tpu.memory_space<vmem>>, vector<16x32xf32>
      tpu.vector_store %arg8[%c0_34, %c0_35], %60 {strides = array<i32>} : memref<16x32xf32, #tpu.memory_space<vmem>>, vector<16x32xf32>,
    } else {
    }
    return
  }
  func.func @transform_0(%arg0: i32, %arg1: i32) -> (i32, i32) {
    %c0_i32 = arith.constant 0 : i32
    %c0_i32_0 = arith.constant 0 : i32
    return %arg0, %c0_i32 : i32, i32
  }
  func.func @transform_1(%arg0: i32, %arg1: i32) -> (i32, i32) {
    %c0_i32 = arith.constant 0 : i32
    %c0_i32_0 = arith.constant 0 : i32
    %c0_i32_1 = arith.constant 0 : i32
    return %c0_i32, %c0_i32_0 : i32, i32
  }
  func.func @transform_2(%arg0: i32, %arg1: i32) -> (i32, i32) {
    %c0_i32 = arith.constant 0 : i32
    %c0_i32_0 = arith.constant 0 : i32
    return %c0_i32, %arg1 : i32, i32
  }
  func.func @transform_3(%arg0: i32, %arg1: i32) -> (i32, i32) {
    %c0_i32 = arith.constant 0 : i32
    %c0_i32_0 = arith.constant 0 : i32
    return %c0_i32, %arg1 : i32, i32
  }
  func.func @transform_4(%arg0: i32, %arg1: i32) -> (i32, i32) {
    %c0_i32 = arith.constant 0 : i32
    %c0_i32_0 = arith.constant 0 : i32
    return %arg1, %c0_i32 : i32, i32
  }
  func.func @transform_5(%arg0: i32, %arg1: i32) -> (i32, i32) {
    %c0_i32 = arith.constant 0 : i32
    %c0_i32_0 = arith.constant 0 : i32
    %c0_i32_1 = arith.constant 0 : i32
    return %c0_i32, %c0_i32_0 : i32, i32
  }
  func.func @transform_6(%arg0: i32, %arg1: i32) -> (i32, i32) {
    %c0_i32 = arith.constant 0 : i32
    %c0_i32_0 = arith.constant 0 : i32
    return %arg0, %c0_i32 : i32, i32
  }
}

</mosaic_0001>

<bundles_post_ra>
// kernel: tpu_custom_call.1
= control target key start
LH: loop header
LB: loop body
LE: loop exit
PB: predicated region body
PF: predicated region fallthrough
CT: control target
= control target key end

     0   :  { %vm32_vm0 = vcmask 261120   ;;  %s578_s0 = inlined_call_operand.vmem [shape: f32[16,32], index: 0, kind: input, shape index: {}]   ;;  %s579_s1 = inlined_call_operand.vmem [shape: f32[1,32], index: 1, kind: input, shape index: {}]   ;;  %s580_s2 = inlined_call_operand.vmem [shape: f32[32,128], index: 2, kind: input, shape index: {}]   ;;  %s581_s3 = inlined_call_operand.vmem [shape: f32[1,128], index: 3, kind: input, shape index: {}]   ;;  %s582_s4 = inlined_call_operand.vmem [shape: f32[128,32], index: 4, kind: input, shape index: {}]   ;;  %s583_s5 = inlined_call_operand.vmem [shape: f32[1,32], index: 5, kind: input, shape index: {}]   ;;  %s584_s6 = inlined_call_operand.hbm [shape: f32[16,32], index: 6, kind: output, shape index: {}]  }
   0x1   :  { %v28_v0 = vld [vmem:[%s578_s0] sm:$0xff]  ;;  %v29_v1 = vld [vmem:[%s578_s0 + $0x8] sm:$0xff] }
   0x2   :  { %v30_v2 = vmul.f32 %v28_v0, %v28_v0  ;;  %v31_v3 = vmul.f32 %v29_v1, %v29_v1 }
   0x3   :  { %11 = vsyncpa [#allocation5], 0  ;;  %v63_v6 = vld [vmem:[%s580_s2 + $0x18] sm:$0xff]  ;;  %v62_v7 = vld [vmem:[%s580_s2 + $0x10] sm:$0xff]  ;;  %v449_v39 = vmov 0.0   ;;  %s450_s15 = smov [#allocation4]  }
   0x4   :  { %v33_v4 = vsel %vm32_vm0, %v30_v2, 0.0  ;;  %v36_v5 = vsel %vm32_vm0, %v31_v3, 0.0  ;;  %365 = vmatprep.subr.mxu0 %v63_v6  ;;  %v61_v8 = vld [vmem:[%s580_s2 + $0x8] sm:$0xff]  ;;  %v60_v9 = vld [vmem:[%s580_s2] sm:$0xff]  ;;  %v224_v23 = vld [vmem:[%s582_s4 + $0x78] sm:$0xff]  ;;  %57 = vst.msk [vmem:[#allocation3 + $0x8] sm:$0xff] %vm32_vm0, %v449_v39 }
   0x5   :  { %34 = vadd.xlane.f32.xlu0 %v33_v4  ;;  %366 = vmatpush3.msra.mxu0 %v63_v6  ;;  %v336_v15 = vld [vmem:[%s579_s1] ss:$0 sm:$0xff]  ;;  %v223_v24 = vld [vmem:[%s582_s4 + $0x70] sm:$0xff]  ;;  %v222_v25 = vld [vmem:[%s582_s4 + $0x68] sm:$0xff]  ;;  %56 = vst.msk [vmem:[#allocation3] sm:$0xff] %vm32_vm0, %v449_v39  ;;  %s325_s16 = sshll.u32 %s450_s15, 4  ;;  %s326_s16 = int_to_ptr.vmem [resolvable:$true] %s325_s16 }
   0x6   :  { %367 = vmatprep.subr.mxu0 %v62_v7  ;;  %376 = vmatprep.subr.mxu1 %v224_v23  ;;  %v221_v26 = vld [vmem:[%s582_s4 + $0x60] sm:$0xff]  ;;  %v220_v27 = vld [vmem:[%s582_s4 + $0x58] sm:$0xff]  ;;  %v219_v28 = vld [vmem:[%s582_s4 + $0x50] sm:$0xff]  ;;  %s427_s17 = scalar_lea.vmem %s326_s16, 256  ;;  %p432_p1 = scmp.lt.s32.totalorder %s326_s16, %s326_s16 }
   0x7   :  { %368 = vmatpush3.msra.mxu0 %v62_v7  ;;  %377 = vmatpush3.msra.mxu1 %v224_v23  ;;  %v218_v29 = vld [vmem:[%s582_s4 + $0x48] sm:$0xff]  ;;  %v217_v30 = vld [vmem:[%s582_s4 + $0x40] sm:$0xff]  ;;  %v216_v31 = vld [vmem:[%s582_s4 + $0x38] sm:$0xff]  ;;  %p428_p0 = scmp.ne.s32.totalorder %s326_s16, %s427_s17  ;;  %p433_p2 = scmp.lt.s32.totalorder %s427_s17, %s427_s17 }
   0x8   :  { %369 = vmatprep.subr.mxu0 %v61_v8  ;;  %378 = vmatprep.subr.mxu1 %v223_v24  ;;  %v215_v32 = vld [vmem:[%s582_s4 + $0x30] sm:$0xff]  ;;  %v214_v33 = vld [vmem:[%s582_s4 + $0x28] sm:$0xff]  ;;  %v213_v34 = vld [vmem:[%s582_s4 + $0x20] sm:$0xff] }
   0x9   :  { %37 = vadd.xlane.f32.xlu0 %v36_v5  ;;  %370 = vmatpush3.msra.mxu0 %v61_v8  ;;  %v212_v35 = vld [vmem:[%s582_s4 + $0x18] sm:$0xff]  ;;  %v211_v36 = vld [vmem:[%s582_s4 + $0x10] sm:$0xff]  ;;  %v210_v37 = vld [vmem:[%s582_s4 + $0x8] sm:$0xff]  ;;  %p434_p3 = por %p433_p2, %p432_p1 }
   0xa   :  { %371 = vmatprep.subr.mxu0 %v60_v9  ;;  %379 = vmatpush3.msra.mxu1 %v223_v24  ;;  %v209_v38 = vld [vmem:[%s582_s4] sm:$0xff] }
   0xb   :  { %372 = vmatpush3.msra.mxu0 %v60_v9  ;;  %380 = vmatprep.subr.mxu1 %v222_v25  ;;  %v337_v40 = vld [vmem:[%s581_s3] ss:$0 sm:$0xff]  ;;  %p435_p4 = pnand %p434_p3, %p428_p0 }
   0xc   :  { %381 = vmatpush3.msra.mxu1 %v222_v25 }
   0xd   :  { %382 = vmatprep.subr.mxu1 %v221_v26 }
   0xe   :  { %383 = vmatpush3.msra.mxu1 %v221_v26 }
   0xf   :  { %384 = vmatprep.subr.mxu1 %v220_v27 }
  0x10   :  { %385 = vmatpush3.msra.mxu1 %v220_v27 }
  0x11   :  { %386 = vmatprep.subr.mxu1 %v219_v28 }
  0x12   :  { %387 = vmatpush3.msra.mxu1 %v219_v28 }
  0x13   :  { %388 = vmatprep.subr.mxu1 %v218_v29 }
  0x14   :  { %389 = vmatpush3.msra.mxu1 %v218_v29 }
  0x15   :  { %390 = vmatprep.subr.mxu1 %v217_v30 }
  0x16   :  { %391 = vmatpush3.msra.mxu1 %v217_v30 }
  0x17   :  { %392 = vmatprep.subr.mxu1 %v216_v31 }
  0x18   :  { %393 = vmatpush3.msra.mxu1 %v216_v31  ;;  %v208_v31 = vld [vmem:[#allocation3 + $0x8] sm:$0xff] }
  0x19   :  { %394 = vmatprep.subr.mxu1 %v215_v32 }
  0x1a   :  { %395 = vmatpush3.msra.mxu1 %v215_v32 }
  0x1b   :  { %396 = vmatprep.subr.mxu1 %v214_v33 }
  0x1c   :  { %397 = vmatpush3.msra.mxu1 %v214_v33  ;;  %v207_v33 = vld [vmem:[#allocation3] sm:$0xff] }
  0x1d   :  { %398 = vmatprep.subr.mxu1 %v213_v34 }
  0x1e   :  { %399 = vmatpush3.msra.mxu1 %v213_v34 }
  0x1f   :  { %400 = vmatprep.subr.mxu1 %v212_v35 }
  0x20   :  { %401 = vmatpush3.msra.mxu1 %v212_v35 }
  0x21   :  { %402 = vmatprep.subr.mxu1 %v211_v36 }
  0x22   :  { %403 = vmatpush3.msra.mxu1 %v211_v36 }
  0x23   :  { %404 = vmatprep.subr.mxu1 %v210_v37 }
  0x24   :  { %405 = vmatpush3.msra.mxu1 %v210_v37  ;;  %v340_v37 = vld [vmem:[%s583_s5] ss:$0 sm:$0xff] }
  0x25   :  { %406 = vmatprep.subr.mxu1 %v209_v38 }
  0x26   :  { %407 = vmatpush3.msra.mxu1 %v209_v38 }
  0x8e   :  { %v35_v10 = vpop.xlane.xlu0 %34 }
  0x8f   :  { %v39_v11 = vmax.f32 %v35_v10, 1e-24 }
  0x91   :  { %415 = vrsqrt.f32 %v39_v11 }
  0x92   :  { %v38_v12 = vpop.xlane.xlu0 %37 }
  0x93   :  { %v40_v13 = vmax.f32 %v38_v12, 1e-24 }
  0x95   :  { %417 = vrsqrt.f32 %v40_v13 }
  0x9e   :  { %v416_v14 = vpop.eup %415 }
  0x9f   :  { %v43_v16 = vmul.f32 %v416_v14, %v28_v0 }
  0xa1   :  { %v52_v17 = vmul.f32 %v336_v15, %v43_v16 }
  0xa2   :  { %v418_v18 = vpop.eup %417 }
  0xa3   :  { %54 = vst.msk [vmem:[#allocation2] sm:$0xff] %vm32_vm0, %v52_v17  ;;  %v44_v19 = vmul.f32 %v418_v18, %v29_v1 }
  0xa5   :  { %v53_v20 = vmul.f32 %v336_v15, %v44_v19 }
  0xa7   :  { %55 = vst.msk [vmem:[#allocation2 + $0x8] sm:$0xff] %vm32_vm0, %v53_v20 }
  0xaa   :  { %v58_v21 = vld [vmem:[#allocation2] sm:$0xff] }
  0xab   :  { %373 = vmatprep.mubr.msk.f32.mxu0 %vm32_vm0, %v58_v21 }
  0xae   :  { %v59_v22 = vld [vmem:[#allocation2 + $0x8] sm:$0xff] }
  0xaf   :  { %374 = vmatmul.mubr.msk.f32.vlgmr.msra.gmra.mxu0 %vm32_vm0, %v59_v22 }
 0x16f   :  { %v375_v41 = vpop.f32.mrf.mxu0 }
 0x170   :  { %v150_v42 = vadd.f32 %v375_v41, %v337_v40 }
 0x171   :  { %v144_v43 = vpop.f32.mrf.mxu0 }
 0x172   :  { %v156_v44 = vmul.f32 0.70710677, %v150_v42  ;;  %v145_v45 = vadd.f32 %v337_v40, %v144_v43  ;;  %v154_v28 = vmul.f32 0.5, %v150_v42 }
 0x174   :  { %v158_v46 = vand.u32 2147483647, %v156_v44  ;;  %v155_v47 = vmul.f32 0.70710677, %v145_v45  ;;  %vm198_vm1 = vcmp.ge.f32.partialorder %v156_v44, 0.0  ;;  %v153_v26 = vmul.f32 0.5, %v145_v45 }
 0x176   :  { %v160_v48 = vmul.f32 0.3275911, %v158_v46  ;;  %v157_v49 = vand.u32 2147483647, %v155_v47  ;;  %v186_v53 = vsub.f32 0.0, %v158_v46  ;;  %vm197_vm2 = vcmp.ge.f32.partialorder %v155_v47, 0.0 }
 0x178   :  { %v162_v50 = vadd.f32 1.0, %v160_v48  ;;  %v159_v51 = vmul.f32 0.3275911, %v157_v49  ;;  %v185_v54 = vsub.f32 0.0, %v157_v49  ;;  %v188_v55 = vmul.f32 %v186_v53, %v158_v46 }
 0x17a   :  { %419 = vrcp.f32 %v162_v50  ;;  %v161_v52 = vadd.f32 1.0, %v159_v51  ;;  %v187_v57 = vmul.f32 %v185_v54, %v157_v49  ;;  %v191_v58 = vmul.f32 1.442695, %v188_v55 }
 0x17c   :  { %421 = vrcp.f32 %v161_v52  ;;  %v189_v62 = vmul.f32 1.442695, %v187_v57 }
 0x17d   :  { %423 = vpow2.f32 %v191_v58 }
 0x17e   :  { %425 = vpow2.f32 %v189_v62 }
 0x187   :  { %v420_v56 = vpop.eup %419 }
 0x188   :  { %v168_v59 = vmul.f32 1.0614054, %v420_v56 }
 0x189   :  { %v422_v60 = vpop.eup %421 }
 0x18a   :  { %v170_v61 = vadd.f32 -1.4531521, %v168_v59  ;;  %v167_v63 = vmul.f32 1.0614054, %v422_v60  ;;  %v424_v13 = vpop.eup %423 }
 0x18b   :  { %v426_v17 = vpop.eup %425 }
 0x18c   :  { %v172_v0 = vmul.f32 %v420_v56, %v170_v61  ;;  %v169_v1 = vadd.f32 -1.4531521, %v167_v63 }
 0x18e   :  { %v174_v2 = vadd.f32 1.4214138, %v172_v0  ;;  %v171_v3 = vmul.f32 %v422_v60, %v169_v1 }
 0x190   :  { %v176_v4 = vmul.f32 %v420_v56, %v174_v2  ;;  %v173_v5 = vadd.f32 1.4214138, %v171_v3 }
 0x192   :  { %v178_v6 = vadd.f32 -0.28449672, %v176_v4  ;;  %v175_v7 = vmul.f32 %v422_v60, %v173_v5 }
 0x194   :  { %v180_v8 = vmul.f32 %v420_v56, %v178_v6  ;;  %v177_v9 = vadd.f32 -0.28449672, %v175_v7 }
 0x196   :  { %v182_v10 = vadd.f32 0.2548296, %v180_v8  ;;  %v179_v11 = vmul.f32 %v422_v60, %v177_v9 }
 0x198   :  { %v184_v12 = vmul.f32 %v420_v56, %v182_v10  ;;  %v181_v14 = vadd.f32 0.2548296, %v179_v11 }
 0x19a   :  { %v194_v15 = vmul.f32 %v424_v13, %v184_v12  ;;  %v183_v16 = vmul.f32 %v422_v60, %v181_v14 }
 0x19c   :  { %v196_v18 = vsub.f32 1.0, %v194_v15  ;;  %v193_v19 = vmul.f32 %v426_v17, %v183_v16 }
 0x19e   :  { %v200_v20 = vsub.f32 0.0, %v196_v18  ;;  %v195_v21 = vsub.f32 1.0, %v193_v19 }
 0x1a0   :  { %v202_v22 = vsel %vm198_vm1, %v196_v18, %v200_v20  ;;  %v199_v23 = vsub.f32 0.0, %v195_v21 }
 0x1a1   :  { %v204_v25 = vadd.f32 1.0, %v202_v22 }
 0x1a2   :  { %v201_v24 = vsel %vm197_vm2, %v195_v21, %v199_v23 }
 0x1a3   :  { %v203_v27 = vadd.f32 1.0, %v201_v24  ;;  %v206_v30 = vmul.f32 %v204_v25, %v154_v28 }
 0x1a5   :  { %v205_v29 = vmul.f32 %v203_v27, %v153_v26 }
 0x1a7   :  { %408 = vmatprep.mubr.f32.mxu1 %v205_v29 }
 0x1a8   :  { %409 = vmatmul.mubr.f32.vlgmr.msra.gmra.mxu1 %v206_v30 }
 0x268   :  { %v410_v32 = vpop.f32.mrf.mxu1 }
 0x269   :  { %v301_v34 = vadd.f32 %v410_v32, %v208_v31 }
 0x26a   :  { %v291_v35 = vpop.f32.mrf.mxu1 }
 0x26b   :  { %303 = vst.msk [vmem:[#allocation3 + $0x8] sm:$0xff] %vm32_vm0, %v301_v34  ;;  %v300_v36 = vadd.f32 %v291_v35, %v207_v33 }
 0x26d   :  { %302 = vst.msk [vmem:[#allocation3] sm:$0xff] %vm32_vm0, %v300_v36 }
 0x272   :  { %v308_v38 = vld [vmem:[#allocation3 + $0x8] sm:$0xff] }
 0x273   :  { %v317_v39 = vadd.f32 %v340_v37, %v308_v38 }
 0x274   :  { %v307_v40 = vld [vmem:[#allocation3] sm:$0xff] }
 0x275   :  { %v316_v41 = vadd.f32 %v340_v37, %v307_v40  ;;  %319 = vst.msk [vmem:[#allocation4 + $0x8] sm:$0xff] %vm32_vm0, %v317_v39 }
 0x277   :  { %318 = vst.msk [vmem:[#allocation4] sm:$0xff] %vm32_vm0, %v316_v41 }
 0x278   :  { %438 = shalt.err (!%p435_p4)
}
 0x279   :  { %s451_s18 = smov 128   ;;  %s452_s5 = smov 8  }
 0x27a   :  { %331 = dma.vmem_to_hbm [thread:$0]  %s326_s16, 256, %s584_s6, [#allocation5], %s451_s18, %s451_s18, %s452_s5  }
 0x27b   :  { %447 = dma.done.wait [#allocation5], 256  }
 0x27c   :  { %448 = vsyncadd [#allocation5], 4294967040 }
 0x27d   :  { %335 = vsyncpa [#allocation5], 1 }

</bundles_post_ra>
